<compile_context>
chip_gen: v5e
topology: v5e:2x2
jax: 0.10.0
libtpu: 0.0.40
codegen_flags: <defaults>
</compile_context>

<pallas_src>
import functools

import jax
import jax.numpy as jnp
from jax.experimental import pallas as pl
from jax.experimental.pallas import tpu as pltpu

_INV_SQRT2 = 0.7071067811865476  # 1/sqrt(2), hoisted constant

_LANE_CANDIDATES = (1024, 2048, 512, 256, 128)  # lane-dense widths (mult. of 128)
_TILE_BYTES = 4 * 1024 * 1024                   # ~4 MiB per buffer


def _gelu_f32(x, approximate):
    if approximate:
        # tanh GELU: transcendental goes to the EUP slot (frees VALU on v6e/v7x)
        return jax.nn.gelu(x, approximate=True)
    # exact erf GELU, matching torch.nn.GELU() default
    return 0.5 * x * (1.0 + jax.lax.erf(x * _INV_SQRT2))


def _residual_add_kernel(x_ref, o_ref, *, approximate):
    xf = x_ref[...].astype(jnp.float32)          # f32 compute (bf16-safe on v5e)
    o_ref[...] = (_gelu_f32(xf, approximate) + xf).astype(o_ref.dtype)


def _round_up(a, b):
    return ((a + b - 1) // b) * b


def _sublane(dtype):
    # min sublane packing per dtype width: f32 -> 8, bf16 -> 16, int8/fp8 -> 32
    return {4: 8, 2: 16, 1: 32}.get(jnp.dtype(dtype).itemsize, 8)


def _run_2d(x2d, approximate):
    """Run the fused GELU+residual kernel on a lane-dense (rows, lanes) slab."""
    rows, lanes = x2d.shape
    itemsize = jnp.dtype(x2d.dtype).itemsize
    sub = _sublane(x2d.dtype)

    if rows <= sub:
        tm = rows                                 # full-dim block (always legal)
    else:
        tm_max = max(sub, ((_TILE_BYTES // (lanes * itemsize)) // sub) * sub)
        # cap the tile so the grid has >= 2 steps -> both v7x TensorCores busy
        tm = min(tm_max, _round_up(pl.cdiv(rows, 2), sub))
    grid_m = pl.cdiv(rows, tm)                    # ragged last block is masked

    return pl.pallas_call(
        functools.partial(_residual_add_kernel, approximate=approximate),
        out_shape=jax.ShapeDtypeStruct(x2d.shape, x2d.dtype),
        grid_spec=pltpu.PrefetchScalarGridSpec(
            num_scalar_prefetch=0,
            grid=(grid_m,),
            in_specs=[pl.BlockSpec((tm, lanes), lambda i: (i, 0))],
            out_specs=pl.BlockSpec((tm, lanes), lambda i: (i, 0)),
        ),
        compiler_params=pltpu.CompilerParams(
            dimension_semantics=("parallel",),    # shards across TCs on v7x
            vmem_limit_bytes=32 * 1024 * 1024,    # 16 MiB resident fits all gens
        ),
    )(x2d)


def residual_add(x, approximate=False):
    """fn(x) + x with fn = GELU, fused in one tiled Pallas kernel.

    x: any-rank array.  Returns same shape/dtype.
    """
    orig_shape = x.shape
    total = 1
    for d in orig_shape:
        total *= int(d)
    flat = x.reshape(-1)

    if total < 128:
        # tiny input: plain jnp is cheaper than launching a kernel
        xf = flat.astype(jnp.float32)
        out = (_gelu_f32(xf, approximate) + xf).astype(x.dtype)
        return out.reshape(orig_shape)

    lanes = None
    for cand in _LANE_CANDIDATES:
        if total % cand == 0:
            lanes = cand
            break

    if lanes is not None:
        # zero-copy reshape to a lane-dense slab; no pad, no tail slice
        out2d = _run_2d(flat.reshape(total // lanes, lanes), approximate)
        return out2d.reshape(orig_shape)

    # total not a multiple of 128: kernel on the aligned prefix, jnp on the
    # (<128-element) tail — avoids the 2 extra HBM passes of pad + slice.
    main = (total // 128) * 128
    main_out = _run_2d(flat[:main].reshape(main // 128, 128), approximate)
    tailf = flat[main:].astype(jnp.float32)
    tail_out = (_gelu_f32(tailf, approximate) + tailf).astype(x.dtype)
    return jnp.concatenate([main_out.reshape(-1), tail_out]).reshape(orig_shape)


if __name__ == "__main__":
    key = jax.random.PRNGKey(0)
    # Small NCHW input consistent with a conv-style residual block.
    x = jax.random.normal(key, (2, 4, 16, 16), dtype=jnp.float32)

    # exact-erf path (matches torch.nn.GELU() default)
    y = jax.block_until_ready(residual_add(x))
    ref = _gelu_f32(x, approximate=False) + x
    assert y.shape == x.shape and y.dtype == x.dtype
    assert jnp.allclose(y, ref, atol=1e-5, rtol=1e-5)

    # tanh-approximate path (EUP-friendly, recommended on v6e/v7x)
    y2 = jax.block_until_ready(residual_add(x, approximate=True))
    ref2 = jax.nn.gelu(x, approximate=True) + x
    assert jnp.allclose(y2, ref2, atol=1e-4, rtol=1e-4)

    print("KERNEL_OK")
</pallas_src>

<mosaic_0001>
module attributes {stable_mosaic.version = 11 : i64} {
  func.func @_residual_add_kernel(%arg0: i32, %arg1: memref<2x1024xf32, #tpu.memory_space<vmem>>, %arg2: memref<2x1024xf32, #tpu.memory_space<vmem>>) attributes {dimension_semantics = [#tpu.dimension_semantics<parallel>], iteration_bounds = array<i64: 1>, scalar_prefetch = 0 : i64, scratch_operands = 0 : i64, tpu.core_type = #tpu.core_type<tc>, window_params = [{transform_indices = @transform_0, window_bounds = array<i64: 2, 1024>}, {transform_indices = @transform_1, window_bounds = array<i64: 2, 1024>}]} {
    %c0 = arith.constant 0 : index
    %c0_0 = arith.constant 0 : index
    %0 = vector.load %arg1[%c0, %c0_0] : memref<2x1024xf32, #tpu.memory_space<vmem>>, vector<2x1024xf32>
    %cst = arith.constant 5.000000e-01 : f32
    %1 = vector.broadcast %cst : f32 to vector<2x1024xf32>
    %2 = arith.mulf %1, %0 : vector<2x1024xf32>
    %cst_1 = arith.constant 0.707106769 : f32
    %3 = vector.broadcast %cst_1 : f32 to vector<2x1024xf32>
    %4 = arith.mulf %0, %3 : vector<2x1024xf32>
    %5 = math.erf %4 : vector<2x1024xf32>
    %cst_2 = arith.constant 1.000000e+00 : f32
    %6 = vector.broadcast %cst_2 : f32 to vector<2x1024xf32>
    %7 = arith.addf %6, %5 : vector<2x1024xf32>
    %8 = arith.mulf %2, %7 : vector<2x1024xf32>
    %9 = arith.addf %8, %0 : vector<2x1024xf32>
    %c0_3 = arith.constant 0 : index
    %c0_4 = arith.constant 0 : index
    %10 = vector.load %arg2[%c0_3, %c0_4] : memref<2x1024xf32, #tpu.memory_space<vmem>>, vector<2x1024xf32>
    tpu.vector_store %arg2[%c0_3, %c0_4], %9 {strides = array<i32>} : memref<2x1024xf32, #tpu.memory_space<vmem>>, vector<2x1024xf32>,
    return
  }
  func.func @transform_0(%arg0: i32) -> (i32, i32) {
    %c0_i32 = arith.constant 0 : i32
    %c0_i32_0 = arith.constant 0 : i32
    return %arg0, %c0_i32 : i32, i32
  }
  func.func @transform_1(%arg0: i32) -> (i32, i32) {
    %c0_i32 = arith.constant 0 : i32
    %c0_i32_0 = arith.constant 0 : i32
    return %arg0, %c0_i32 : i32, i32
  }
}

</mosaic_0001>

<bundles_post_ra>
// kernel: tpu_custom_call.1
= control target key start
LH: loop header
LB: loop body
LE: loop exit
PB: predicated region body
PF: predicated region fallthrough
CT: control target
= control target key end

     0   :  { %6 = vsyncpa [#allocation3], 0  ;;  %s232_s0 = inlined_call_operand.hbm [shape: f32[2,1024], index: 0, kind: input, shape index: {}]   ;;  %s233_s1 = inlined_call_operand.hbm [shape: f32[2,1024], index: 1, kind: output, shape index: {}]  }
   0x1   :  { %7 = vsyncpa [#allocation4], 0  ;;  %s13_s8 = sshll.u32 %s232_s0, 4  ;;  %s194_s9 = smov [#allocation2]   ;;  %s14_s8 = int_to_ptr.hbm [resolvable:$true] %s13_s8 }
   0x2   :  { %s15_s10 = sshll.u32 %s194_s9, 4  ;;  %s16_s10 = int_to_ptr.vmem [resolvable:$true] %s15_s10 }
   0x3   :  { %18 = dma.hbm_to_vmem [thread:$0]  %s14_s8, 256, %s16_s10, [#allocation3]  }
   0x4   :  { %190 = dma.done.wait [#allocation3], 256  }
   0x5   :  { %191 = vsyncadd [#allocation3], 4294967040  ;;  %v209_v0 = vld [vmem:[#allocation2] sm:$0xff]  ;;  %v211_v1 = vld [vmem:[#allocation2 + $0x8] sm:$0xff]  ;;  %s195_s0 = smov [#allocation5]   ;;  %s124_s14 = sshll.u32 %s233_s1, 4  ;;  %s125_s14 = int_to_ptr.hbm [resolvable:$true] %s124_s14 }
   0x6   :  { %v214_v2 = vmul.f32 0.70710677, %v209_v0  ;;  %v217_v3 = vmul.f32 0.70710677, %v211_v1  ;;  %s122_s11 = sshll.u32 %s195_s0, 4  ;;  %s123_s11 = int_to_ptr.vmem [resolvable:$true] %s122_s11 }
   0x8   :  { %v29_v4 = vmul.f32 %v214_v2, %v214_v2  ;;  %v69_v5 = vmul.f32 %v217_v3, %v217_v3 }
   0xa   :  { %v30_v6 = vmin.f32 %v29_v4, 16.0  ;;  %v70_v7 = vmin.f32 %v69_v5, 16.0 }
   0xc   :  { %v31_v8 = vmul.f32 2.1237322e-06, %v30_v6  ;;  %v42_v9 = vmul.f32 3.8918573e-05, %v30_v6  ;;  %v71_v10 = vmul.f32 2.1237322e-06, %v70_v7 }
   0xd   :  { %v82_v11 = vmul.f32 3.8918573e-05, %v70_v7 }
   0xe   :  { %v32_v12 = vadd.f32 0.00028619796, %v31_v8  ;;  %v43_v13 = vadd.f32 0.001143296, %v42_v9  ;;  %v72_v14 = vadd.f32 0.00028619796, %v71_v10 }
   0xf   :  { %v83_v15 = vadd.f32 0.001143296, %v82_v11 }
  0x10   :  { %v33_v16 = vmul.f32 %v32_v12, %v30_v6  ;;  %v44_v17 = vmul.f32 %v43_v13, %v30_v6  ;;  %v73_v18 = vmul.f32 %v72_v14, %v70_v7  ;;  %v25_v12 = vmul.f32 0.5, %v209_v0 }
  0x11   :  { %v84_v19 = vmul.f32 %v83_v15, %v70_v7  ;;  %v26_v14 = vmul.f32 0.5, %v211_v1 }
  0x12   :  { %v34_v20 = vadd.f32 0.0036580483, %v33_v16  ;;  %v45_v21 = vadd.f32 0.014752088, %v44_v17  ;;  %v74_v22 = vadd.f32 0.0036580483, %v73_v18 }
  0x13   :  { %v85_v23 = vadd.f32 0.014752088, %v84_v19 }
  0x14   :  { %v35_v24 = vmul.f32 %v34_v20, %v30_v6  ;;  %v46_v25 = vmul.f32 %v45_v21, %v30_v6  ;;  %v75_v26 = vmul.f32 %v74_v22, %v70_v7 }
  0x15   :  { %v86_v27 = vmul.f32 %v85_v23, %v70_v7 }
  0x16   :  { %v47_v28 = vadd.f32 0.112945676, %v46_v25  ;;  %v36_v29 = vadd.f32 0.05243302, %v35_v24  ;;  %v76_v32 = vadd.f32 0.05243302, %v75_v26 }
  0x17   :  { %v87_v30 = vadd.f32 0.112945676, %v86_v27 }
  0x18   :  { %v48_v31 = vmul.f32 %v47_v28, %v30_v6  ;;  %v37_v35 = vmul.f32 %v36_v29, %v30_v6  ;;  %v77_v38 = vmul.f32 %v76_v32, %v70_v7 }
  0x19   :  { %v88_v33 = vmul.f32 %v87_v30, %v70_v7 }
  0x1a   :  { %v49_v34 = vadd.f32 0.4994258, %v48_v31  ;;  %v38_v41 = vadd.f32 0.18741608, %v37_v35  ;;  %v78_v43 = vadd.f32 0.18741608, %v77_v38 }
  0x1b   :  { %v89_v36 = vadd.f32 0.4994258, %v88_v33 }
  0x1c   :  { %v50_v37 = vmul.f32 %v49_v34, %v30_v6  ;;  %v39_v44 = vmul.f32 %v38_v41, %v30_v6  ;;  %v79_v45 = vmul.f32 %v78_v43, %v70_v7 }
  0x1d   :  { %v90_v39 = vmul.f32 %v89_v36, %v70_v7 }
  0x1e   :  { %v51_v40 = vadd.f32 1.0, %v50_v37  ;;  %v40_v48 = vadd.f32 1.1283791, %v39_v44  ;;  %v80_v51 = vadd.f32 1.1283791, %v79_v45 }
  0x1f   :  { %v91_v42 = vadd.f32 1.0, %v90_v39 }
  0x20   :  { %138 = vrcp.f32 %v51_v40  ;;  %vm57_vm0 = vweird.f32 %v51_v40  ;;  %v63_v50 = vand.u32 2147483648, %v51_v40  ;;  %v61_v54 = vand.u32 2147483647, %v51_v40 }
  0x21   :  { %140 = vrcp.f32 %v91_v42  ;;  %v103_v55 = vand.u32 2147483648, %v91_v42  ;;  %vm97_vm2 = vweird.f32 %v91_v42  ;;  %v101_v57 = vand.u32 2147483647, %v91_v42 }
  0x22   :  { %v64_v59 = vor.u32 1.1754944e-38, %v63_v50  ;;  %v41_v61 = vmul.f32 %v40_v48, %v214_v2  ;;  %vm62_vm5 = vcmp.eq.f32.partialorder %v61_v54, 8.507059e+37  ;;  %v81_v4 = vmul.f32 %v80_v51, %v217_v3 }
  0x23   :  { %v104_v63 = vor.u32 1.1754944e-38, %v103_v55  ;;  %vm102_vm7 = vcmp.eq.f32.partialorder %v101_v57, 8.507059e+37 }
  0x26   :  { %v139_v46 = vpop.eup %138 }
  0x27   :  { %v141_v47 = vpop.eup %140  ;;  %v53_v49 = vmul.f32 %v139_v46, %v51_v40  ;;  %vm58_vm1 = vweird.f32 %v139_v46 }
  0x28   :  { %v93_v52 = vmul.f32 %v141_v47, %v91_v42  ;;  %vm98_vm3 = vweird.f32 %v141_v47  ;;  %vm59_vm4 = vmor %vm57_vm0, %vm58_vm1 }
  0x29   :  { %v54_v53 = vsub.f32 1.0, %v53_v49  ;;  %vm99_vm6 = vmor %vm97_vm2, %vm98_vm3 }
  0x2a   :  { %v94_v56 = vsub.f32 1.0, %v93_v52 }
  0x2b   :  { %v55_v58 = vmul.f32 %v139_v46, %v54_v53 }
  0x2c   :  { %v95_v60 = vmul.f32 %v141_v47, %v94_v56 }
  0x2d   :  { %v56_v62 = vadd.f32 %v139_v46, %v55_v58 }
  0x2e   :  { %v96_v5 = vadd.f32 %v141_v47, %v95_v60 }
  0x2f   :  { %v60_v6 = vsel %vm59_vm4, %v139_v46, %v56_v62 }
  0x30   :  { %v65_v7 = vsel %vm62_vm5, %v64_v59, %v60_v6  ;;  %v100_v8 = vsel %vm99_vm6, %v141_v47, %v96_v5 }
  0x31   :  { %v66_v9 = vmul.f32 %v65_v7, %v41_v61  ;;  %v105_v10 = vsel %vm102_vm7, %v104_v63, %v100_v8 }
  0x32   :  { %v106_v11 = vmul.f32 %v105_v10, %v81_v4 }
  0x33   :  { %v134_v13 = vclamps-f32 %v66_v9, 1.0 }
  0x34   :  { %v135_v2 = vclamps-f32 %v106_v11, 1.0 }
  0x35   :  { %v109_v15 = vadd.f32 1.0, %v134_v13 }
  0x36   :  { %v110_v16 = vadd.f32 1.0, %v135_v2 }
  0x37   :  { %v111_v17 = vmul.f32 %v109_v15, %v25_v12 }
  0x38   :  { %v112_v3 = vmul.f32 %v110_v16, %v26_v14 }
  0x39   :  { %v113_v18 = vadd.f32 %v111_v17, %v209_v0 }
  0x3a   :  { %v114_v19 = vadd.f32 %v112_v3, %v211_v1 }
  0x3b   :  { %115 = vst [vmem:[#allocation5] sm:$0xff] %v113_v18 }
  0x3c   :  { %116 = vst [vmem:[#allocation5 + $0x8] sm:$0xff] %v114_v19 }
  0x3d   :  { %127 = dma.vmem_to_hbm [thread:$0]  %s123_s11, 256, %s125_s14, [#allocation4]  }
  0x3e   :  { %192 = dma.done.wait [#allocation4], 256  }
  0x3f   :  { %193 = vsyncadd [#allocation4], 4294967040 }
  0x40   :  { %132 = vsyncpa [#allocation3], 1 }
  0x41   :  { %133 = vsyncpa [#allocation4], 1 }

</bundles_post_ra>
